<compile_context>
chip_gen: v7x
topology: tpu7x:2x2x1
jax: 0.10.0
libtpu: 0.0.40
codegen_flags: <defaults>
</compile_context>

<pallas_src>
import functools

import jax
import jax.numpy as jnp
from jax.experimental import pallas as pl
from jax.experimental.pallas import tpu as pltpu

_LANE = 128
_SUBLANE = 8


def _round_up(x, m):
    return (x + m - 1) // m * m


# --------------------------------------------------------------------------
# Kernels
# --------------------------------------------------------------------------
def _aggregate_relu_kernel(a_ref, xw1_ref, b1_ref, h_ref):
    """H_tile = relu(A_tile @ XW1 + b1).  A, XW1 in bf16; f32 accumulation."""
    agg = jnp.dot(a_ref[...], xw1_ref[...], preferred_element_type=jnp.float32)
    h_ref[...] = jnp.maximum(agg + b1_ref[...], 0.0)


def _aggregate_logsoftmax_kernel(a_ref, hw2_ref, b2_ref, out_ref):
    """Z_tile = A_tile @ HW2 + b2; out = log_softmax(Z, axis=1)."""
    z = jnp.dot(a_ref[...], hw2_ref[...], preferred_element_type=jnp.float32)
    z = z + b2_ref[...]
    m = jnp.max(z, axis=1, keepdims=True)
    lse = jnp.log(jnp.sum(jnp.exp(z - m), axis=1, keepdims=True)) + m
    out_ref[...] = z - lse


def _row_tiled_aggregate(kernel, a_bf16, feat, bias, out_cols, tm):
    """Run `kernel` over row panels of the (padded) adjacency."""
    n_pad, n = a_bf16.shape
    f_cols = feat.shape[1]
    b_cols = bias.shape[1]
    grid = (n_pad // tm,)
    return pl.pallas_call(
        kernel,
        out_shape=jax.ShapeDtypeStruct((n_pad, out_cols), jnp.float32),
        grid=grid,
        in_specs=[
            # One (TM, N) row panel of A per grid step (the only large tensor).
            pl.BlockSpec((tm, n), lambda i: (i, 0)),
            # Small per-node feature operand: full block, resident across steps.
            pl.BlockSpec((n, f_cols), lambda i: (0, 0)),
            # Bias row: resident.
            pl.BlockSpec((1, b_cols), lambda i: (0, 0)),
        ],
        out_specs=pl.BlockSpec((tm, out_cols), lambda i: (i, 0)),
        compiler_params=pltpu.CompilerParams(
            dimension_semantics=("parallel",),
            vmem_limit_bytes=32 * 1024 * 1024,
        ),
    )(a_bf16, feat, bias)


# --------------------------------------------------------------------------
# Forward pass wrapper
# --------------------------------------------------------------------------
@functools.partial(jax.jit, static_argnames=("tm",))
def gcn_forward(a_hat, x, w1, b1, w2, b2, *, tm=512):
    """log_softmax( A @ relu(A @ (X W1) + b1) W2 + b2 , axis=1 )."""
    N, _ = x.shape
    HID = w1.shape[1]
    C = w2.shape[1]
    HP = _round_up(HID, _LANE)  # lane-dense hidden width

    # Pick a row tile: multiple of 8, divides the padded row count, and keeps
    # the double-buffered bf16 A panel within a conservative VMEM budget.
    budget = 20 * 1024 * 1024
    tm_eff = _round_up(min(tm, _round_up(N, _SUBLANE)), _SUBLANE)
    while tm_eff > _SUBLANE and 2 * tm_eff * N * 2 > budget:
        tm_eff = _round_up(tm_eff // 2, _SUBLANE)
    n_pad = _round_up(N, tm_eff)

    # bf16 adjacency, row-padded with zeros so it tiles evenly.
    a_bf16 = (
        jnp.zeros((n_pad, N), jnp.bfloat16).at[:N, :].set(a_hat.astype(jnp.bfloat16))
    )

    # Hoisted tiny transform #1: XW1 computed once, zero-padded to lane width.
    xw1 = jnp.zeros((N, HP), jnp.float32).at[:, :HID].set(jnp.dot(x, w1))
    b1p = jnp.zeros((1, HP), jnp.float32).at[:, :HID].set(b1)

    # Layer 1: H = relu(A @ XW1 + b1), row-tiled over A.
    h = _row_tiled_aggregate(
        _aggregate_relu_kernel, a_bf16, xw1.astype(jnp.bfloat16), b1p, HP, tm_eff
    )

    # Hoisted tiny transform #2: HW2 computed once from the real rows/columns.
    hw2 = jnp.dot(h[:N, :HID], w2).astype(jnp.bfloat16)  # [N, C]

    # Layer 2: Z = A @ HW2 + b2, then log_softmax over classes.
    out = _row_tiled_aggregate(
        _aggregate_logsoftmax_kernel, a_bf16, hw2, b2.astype(jnp.float32), C, tm_eff
    )
    return out[:N]


# --------------------------------------------------------------------------
# Glue: dense symmetrically-normalized adjacency (GCNConv convention)
# --------------------------------------------------------------------------
def build_normalized_adjacency(edge_index, num_nodes):
    """D^-1/2 (A + I) D^-1/2, undirected, with self-loops."""
    src, dst = edge_index[0], edge_index[1]
    a = jnp.zeros((num_nodes, num_nodes), dtype=jnp.float32)
    a = a.at[src, dst].set(1.0)
    a = jnp.maximum(a, a.T)
    a = jnp.maximum(a, jnp.eye(num_nodes, dtype=jnp.float32))
    deg = jnp.sum(a, axis=1)
    d_inv_sqrt = 1.0 / jnp.sqrt(deg)
    return d_inv_sqrt[:, None] * a * d_inv_sqrt[None, :]


def gcn_reference(a_hat, x, w1, b1, w2, b2):
    h = jnp.maximum(jnp.dot(a_hat, jnp.dot(x, w1)) + b1, 0.0)
    z = jnp.dot(a_hat, jnp.dot(h, w2)) + b2
    return jax.nn.log_softmax(z, axis=1)


if __name__ == "__main__":
    # Small synthetic stand-in for the ego-facebook dataset.
    N = 256      # num_nodes
    F = 8        # dataset.num_node_features
    HID = 16     # hidden size from GCNConv(F, 16)
    C = 4        # dataset.num_classes
    E = 2048     # num_edges

    key = jax.random.PRNGKey(0)
    k_x, k_src, k_dst, k_w1, k_w2 = jax.random.split(key, 5)

    x = jax.random.normal(k_x, (N, F), dtype=jnp.float32)
    edge_index = jnp.stack(
        [
            jax.random.randint(k_src, (E,), 0, N),
            jax.random.randint(k_dst, (E,), 0, N),
        ],
        axis=0,
    )  # [2, E], like data.edge_index

    a_hat = build_normalized_adjacency(edge_index, N)

    # Deterministic glorot-ish init (shapes from GCNConv(F,16), GCNConv(16,C)).
    w1 = jax.random.normal(k_w1, (F, HID), dtype=jnp.float32) / jnp.sqrt(F)
    b1 = jnp.zeros((1, HID), dtype=jnp.float32)
    w2 = jax.random.normal(k_w2, (HID, C), dtype=jnp.float32) / jnp.sqrt(HID)
    b2 = jnp.zeros((1, C), dtype=jnp.float32)

    # tm=64 -> 4 row panels: exercises the parallel row-tiled pipeline.
    out = gcn_forward(a_hat, x, w1, b1, w2, b2, tm=64)
    out = jax.block_until_ready(out)

    assert out.shape == (N, C)

    # Sanity: rows of exp(log_softmax) sum to 1 (no NaN/inf).
    row_sums = jnp.sum(jnp.exp(out), axis=1)
    assert bool(jnp.all(jnp.abs(row_sums - 1.0) < 1e-4))

    # Against an f32 reference (bf16 adjacency -> loose but tight-enough tol).
    ref = gcn_reference(a_hat, x, w1, b1, w2, b2)
    max_err = float(jnp.max(jnp.abs(out - ref)))
    assert max_err < 0.1, f"max |out - ref| = {max_err}"

    print("KERNEL_OK")
</pallas_src>

<mosaic_0001>
module attributes {stable_mosaic.version = 11 : i64} {
  func.func @_aggregate_relu_kernel(%arg0: i32, %arg1: memref<64x256xbf16, #tpu.memory_space<vmem>>, %arg2: memref<256x128xbf16, #tpu.memory_space<vmem>>, %arg3: memref<1x128xf32, #tpu.memory_space<vmem>>, %arg4: memref<64x128xf32, #tpu.memory_space<vmem>>) attributes {dimension_semantics = [#tpu.dimension_semantics<parallel>], iteration_bounds = array<i64: 4>, scalar_prefetch = 0 : i64, scratch_operands = 0 : i64, tpu.core_type = #tpu.core_type<tc>, window_params = [{transform_indices = @transform_0, window_bounds = array<i64: 64, 256>}, {pipeline_mode = #tpu.pipeline_mode<synchronous>, transform_indices = @transform_1, window_bounds = array<i64: 256, 128>}, {pipeline_mode = #tpu.pipeline_mode<synchronous>, transform_indices = @transform_2, window_bounds = array<i64: 1, 128>}, {transform_indices = @transform_3, window_bounds = array<i64: 64, 128>}]} {
    %c0 = arith.constant 0 : index
    %c0_0 = arith.constant 0 : index
    %0 = vector.load %arg1[%c0, %c0_0] : memref<64x256xbf16, #tpu.memory_space<vmem>>, vector<64x256xbf16>
    %c0_1 = arith.constant 0 : index
    %c0_2 = arith.constant 0 : index
    %1 = vector.load %arg2[%c0_1, %c0_2] : memref<256x128xbf16, #tpu.memory_space<vmem>>, vector<256x128xbf16>
    %cst = arith.constant dense<0.000000e+00> : vector<64x128xf32>
    %2 = tpu.matmul %0, %1, %cst {dimension_numbers = #tpu.dot_dimension_numbers<[1], [0], [0], [1], [0, 0, 1, 1], [], []>} : vector<64x256xbf16>, vector<256x128xbf16>, vector<64x128xf32> -> vector<64x128xf32>
    %c0_3 = arith.constant 0 : index
    %c0_4 = arith.constant 0 : index
    %3 = vector.load %arg3[%c0_3, %c0_4] : memref<1x128xf32, #tpu.memory_space<vmem>>, vector<1x128xf32>
    %4 = vector.broadcast %3 : vector<1x128xf32> to vector<64x128xf32>
    %5 = arith.addf %2, %4 : vector<64x128xf32>
    %cst_5 = arith.constant 0.000000e+00 : f32
    %6 = vector.broadcast %cst_5 : f32 to vector<64x128xf32>
    %7 = arith.maximumf %5, %6 : vector<64x128xf32>
    %c0_6 = arith.constant 0 : index
    %c0_7 = arith.constant 0 : index
    %8 = vector.load %arg4[%c0_6, %c0_7] : memref<64x128xf32, #tpu.memory_space<vmem>>, vector<64x128xf32>
    tpu.vector_store %arg4[%c0_6, %c0_7], %7 {strides = array<i32>} : memref<64x128xf32, #tpu.memory_space<vmem>>, vector<64x128xf32>,
    return
  }
  func.func @transform_0(%arg0: i32) -> (i32, i32) {
    %c0_i32 = arith.constant 0 : i32
    %c0_i32_0 = arith.constant 0 : i32
    return %arg0, %c0_i32 : i32, i32
  }
  func.func @transform_1(%arg0: i32) -> (i32, i32) {
    %c0_i32 = arith.constant 0 : i32
    %c0_i32_0 = arith.constant 0 : i32
    %c0_i32_1 = arith.constant 0 : i32
    return %c0_i32, %c0_i32_0 : i32, i32
  }
  func.func @transform_2(%arg0: i32) -> (i32, i32) {
    %c0_i32 = arith.constant 0 : i32
    %c0_i32_0 = arith.constant 0 : i32
    %c0_i32_1 = arith.constant 0 : i32
    return %c0_i32, %c0_i32_0 : i32, i32
  }
  func.func @transform_3(%arg0: i32) -> (i32, i32) {
    %c0_i32 = arith.constant 0 : i32
    %c0_i32_0 = arith.constant 0 : i32
    return %arg0, %c0_i32 : i32, i32
  }
}

module attributes {stable_mosaic.version = 11 : i64} {
  func.func @_aggregate_logsoftmax_kernel(%arg0: i32, %arg1: memref<64x256xbf16, #tpu.memory_space<vmem>>, %arg2: memref<256x4xbf16, #tpu.memory_space<vmem>>, %arg3: memref<1x4xf32, #tpu.memory_space<vmem>>, %arg4: memref<64x4xf32, #tpu.memory_space<vmem>>) attributes {dimension_semantics = [#tpu.dimension_semantics<parallel>], iteration_bounds = array<i64: 4>, scalar_prefetch = 0 : i64, scratch_operands = 0 : i64, tpu.core_type = #tpu.core_type<tc>, window_params = [{transform_indices = @transform_0, window_bounds = array<i64: 64, 256>}, {pipeline_mode = #tpu.pipeline_mode<synchronous>, transform_indices = @transform_1, window_bounds = array<i64: 256, 4>}, {pipeline_mode = #tpu.pipeline_mode<synchronous>, transform_indices = @transform_2, window_bounds = array<i64: 1, 4>}, {transform_indices = @transform_3, window_bounds = array<i64: 64, 4>}]} {
    %c0 = arith.constant 0 : index
    %c0_0 = arith.constant 0 : index
    %0 = vector.load %arg1[%c0, %c0_0] : memref<64x256xbf16, #tpu.memory_space<vmem>>, vector<64x256xbf16>
    %c0_1 = arith.constant 0 : index
    %c0_2 = arith.constant 0 : index
    %1 = vector.load %arg2[%c0_1, %c0_2] : memref<256x4xbf16, #tpu.memory_space<vmem>>, vector<256x4xbf16>
    %cst = arith.constant dense<0.000000e+00> : vector<64x4xf32>
    %2 = tpu.matmul %0, %1, %cst {dimension_numbers = #tpu.dot_dimension_numbers<[1], [0], [0], [1], [0, 0, 1, 1], [], []>} : vector<64x256xbf16>, vector<256x4xbf16>, vector<64x4xf32> -> vector<64x4xf32>
    %c0_3 = arith.constant 0 : index
    %c0_4 = arith.constant 0 : index
    %3 = vector.load %arg3[%c0_3, %c0_4] : memref<1x4xf32, #tpu.memory_space<vmem>>, vector<1x4xf32>
    %4 = vector.broadcast %3 : vector<1x4xf32> to vector<64x4xf32>
    %5 = arith.addf %2, %4 : vector<64x4xf32>
    %cst_5 = arith.constant dense<0xFF800000> : vector<64xf32>
    %6 = vector.multi_reduction <maximumf>, %5, %cst_5 [1] : vector<64x4xf32> to vector<64xf32>
    %7 = vector.shape_cast %6 : vector<64xf32> to vector<64x1xf32>
    %8 = vector.broadcast %7 : vector<64x1xf32> to vector<64x4xf32>
    %9 = arith.subf %5, %8 : vector<64x4xf32>
    %10 = math.exp %9 : vector<64x4xf32>
    %cst_6 = arith.constant dense<0.000000e+00> : vector<64xf32>
    %11 = vector.multi_reduction <add>, %10, %cst_6 [1] : vector<64x4xf32> to vector<64xf32>
    %12 = vector.shape_cast %11 : vector<64xf32> to vector<64x1xf32>
    %13 = math.log %12 : vector<64x1xf32>
    %14 = arith.addf %13, %7 : vector<64x1xf32>
    %15 = vector.broadcast %14 : vector<64x1xf32> to vector<64x4xf32>
    %16 = arith.subf %5, %15 : vector<64x4xf32>
    %c0_7 = arith.constant 0 : index
    %c0_8 = arith.constant 0 : index
    %17 = vector.load %arg4[%c0_7, %c0_8] : memref<64x4xf32, #tpu.memory_space<vmem>>, vector<64x4xf32>
    tpu.vector_store %arg4[%c0_7, %c0_8], %16 {strides = array<i32>} : memref<64x4xf32, #tpu.memory_space<vmem>>, vector<64x4xf32>,
    return
  }
  func.func @transform_0(%arg0: i32) -> (i32, i32) {
    %c0_i32 = arith.constant 0 : i32
    %c0_i32_0 = arith.constant 0 : i32
    return %arg0, %c0_i32 : i32, i32
  }
  func.func @transform_1(%arg0: i32) -> (i32, i32) {
    %c0_i32 = arith.constant 0 : i32
    %c0_i32_0 = arith.constant 0 : i32
    %c0_i32_1 = arith.constant 0 : i32
    return %c0_i32, %c0_i32_0 : i32, i32
  }
  func.func @transform_2(%arg0: i32) -> (i32, i32) {
    %c0_i32 = arith.constant 0 : i32
    %c0_i32_0 = arith.constant 0 : i32
    %c0_i32_1 = arith.constant 0 : i32
    return %c0_i32, %c0_i32_0 : i32, i32
  }
  func.func @transform_3(%arg0: i32) -> (i32, i32) {
    %c0_i32 = arith.constant 0 : i32
    %c0_i32_0 = arith.constant 0 : i32
    return %arg0, %c0_i32 : i32, i32
  }
}

</mosaic_0001>

<bundles_post_ra>
// kernel: gcn_forward.3
= control target key start
LH: loop header
LB: loop body
LE: loop exit
PB: predicated region body
PF: predicated region fallthrough
CT: control target
= control target key end

     0   :  { %s785_s12 = smov 0   ;;  %s976_s0 = inlined_call_operand.vmem [shape: bf16[256,256], index: 0, kind: input, shape index: {}]   ;;  %s977_s1 = inlined_call_operand.vmem [shape: bf16[256,4], index: 1, kind: input, shape index: {}]   ;;  %s978_s2 = inlined_call_operand.vmem [shape: f32[1,4], index: 2, kind: input, shape index: {}]   ;;  %s979_s3 = inlined_call_operand.vmem [shape: f32[256,4], index: 3, kind: output, shape index: {}]  }
   0x1 LB: > { %s595_s13 = sadd.s32 4294967295, %s763_s12   ;;  %p599_p0 = scmp.ge.s32.totalorder %s763_s12, 1  ;;  %s763_s12 = sphi %s785_s12, %s13_s12  }
   0x2   : > { %p139_p1 = scmp.lt.s32.totalorder %s763_s12, 5 }
   0x4   : > { %p140_p2 = pnand %p599_p0, %p139_p1 }
   0x5   : > { %v697_v0 = vld [vmem:[%s977_s1 + $0x40] sm:$0xff] (!%p140_p2)   ;;  %s600_s16 = sshll.u32 (!%p140_p2), %s595_s13, 3  ;;  %v699_v2 = vld [vmem:[%s977_s1 + $0x48] sm:$0xff] (!%p140_p2)   ;;  %v701_v4 = vld [vmem:[%s977_s1 + $0x50] sm:$0xff] (!%p140_p2)   ;;  %vm426_vm0 = vcmask (!%p140_p2), 31744  }
   0x6   : > { %143 = sbr.rel (%p140_p2) target bundleno = 595 (0x253), region = 32  ;;  %v698_v1 = vld [vmem:[%s977_s1] sm:$0xff] (!%p140_p2)   ;;  %633 = vmatprep.subr.bf16.mxu0 (!%p140_p2), %v697_v0  ;;  %673 = vmatprep.subr.bf16.mxu1 (!%p140_p2), %v697_v0  ;;  %v700_v3 = vld [vmem:[%s977_s1 + $0x8] sm:$0xff] (!%p140_p2)   ;;  %p165_p3 = scmp.lt.s32.totalorder (!%p140_p2), %s600_s16, 31  ;;  %v702_v5 = vld [vmem:[%s977_s1 + $0x10] sm:$0xff] (!%p140_p2)  }
   0x7   : > { %634 = vmatpush3.bf16.msra.mxu0 (!%p140_p2), %v698_v1  ;;  %681 = vmatpush3.bf16.msra.mxu1 (!%p140_p2), %v698_v1  ;;  %v703_v6 = vld [vmem:[%s977_s1 + $0x58] sm:$0xff] (!%p140_p2)   ;;  %v705_v8 = vld [vmem:[%s977_s1 + $0x60] sm:$0xff] (!%p140_p2)   ;;  %v707_v10 = vld [vmem:[%s977_s1 + $0x68] sm:$0xff] (!%p140_p2)  }
   0x8   : > { %635 = vmatprep.subr.bf16.mxu0 (!%p140_p2), %v699_v2  ;;  %674 = vmatprep.subr.bf16.mxu1 (!%p140_p2), %v699_v2  ;;  %v704_v7 = vld [vmem:[%s977_s1 + $0x18] sm:$0xff] (!%p140_p2)   ;;  %v706_v9 = vld [vmem:[%s977_s1 + $0x20] sm:$0xff] (!%p140_p2)   ;;  %v708_v13 = vld [vmem:[%s977_s1 + $0x28] sm:$0xff] (!%p140_p2)  }
   0x9   : > { %v709_v14 = vld [vmem:[%s977_s1 + $0x70] sm:$0xff] (!%p140_p2)   ;;  %v711_v16 = vld [vmem:[%s977_s1 + $0x78] sm:$0xff] (!%p140_p2)   ;;  %v605_v26 = vld [vmem:[%s978_s2] ss:$0 sm:$0xff] (!%p140_p2) }
   0xa   : > { %v710_v15 = vld [vmem:[%s977_s1 + $0x30] sm:$0xff] (!%p140_p2)   ;;  %v712_v17 = vld [vmem:[%s977_s1 + $0x38] sm:$0xff] (!%p140_p2)  }
   0xb   : > { %636 = vmatpush3.bf16.msra.mxu0 (!%p140_p2), %v700_v3  ;;  %682 = vmatpush3.bf16.msra.mxu1 (!%p140_p2), %v700_v3 }
   0xc   : > { %637 = vmatprep.subr.bf16.mxu0 (!%p140_p2), %v701_v4  ;;  %675 = vmatprep.subr.bf16.mxu1 (!%p140_p2), %v701_v4 }
   0xd   : > { %s981_s16 = smov (!%p165_p3, %s600_s16), 31 }
   0xe   : > { %s632_s4 = sshll.u32 %s981_s16, 3 }
   0xf   : > { %638 = vmatpush3.bf16.msra.mxu0 %v702_v5  ;;  %683 = vmatpush3.bf16.msra.mxu1 %v702_v5  ;;  %s828_s9 = scalar_lea.vmem %s976_s0, %s632_s4  ;;  %s940_s30 = scalar_lea.vmem %s979_s3, %s632_s4 }
  0x10   : > { %639 = vmatprep.subr.bf16.mxu0 %v703_v6  ;;  %676 = vmatprep.subr.bf16.mxu1 %v703_v6  ;;  %v715_v11 = vld [vmem:[%s828_s9 + $0x4] ss:$8 sps:$4 sm:$0xff]   ;;  %v713_v18 = vld [vmem:[%s828_s9] ss:$8 sps:$4 sm:$0xff]   ;;  %v719_v20 = vld [vmem:[%s828_s9 + $0x14] ss:$8 sps:$4 sm:$0xff]  }
  0x11   : > { %v718_v12 = vld [vmem:[%s828_s9 + $0x24] ss:$8 sps:$4 sm:$0xff]   ;;  %393 = vmatprep.mubr.bf16.mxu0 %v715_v11  ;;  %v716_v19 = vld [vmem:[%s828_s9 + $0x20] ss:$8 sps:$4 sm:$0xff]   ;;  %v722_v21 = vld [vmem:[%s828_s9 + $0x34] ss:$8 sps:$4 sm:$0xff]  }
  0x12   : > { %409 = vmatprep.mubr.bf16.mxu1 %v718_v12  ;;  %v721_v22 = vld [vmem:[%s828_s9 + $0x10] ss:$8 sps:$4 sm:$0xff]  }
  0x13   : > { %640 = vmatpush3.bf16.msra.mxu0 %v704_v7  ;;  %684 = vmatpush3.bf16.msra.mxu1 %v704_v7  ;;  %v724_v23 = vld [vmem:[%s828_s9 + $0x30] ss:$8 sps:$4 sm:$0xff]  }
  0x14   : > { %641 = vmatprep.subr.bf16.mxu0 %v705_v8  ;;  %677 = vmatprep.subr.bf16.mxu1 %v705_v8 }
  0x17   : > { %642 = vmatpush3.bf16.msra.mxu0 %v706_v9  ;;  %685 = vmatpush3.bf16.msra.mxu1 %v706_v9 }
  0x18   : > { %643 = vmatprep.subr.bf16.mxu0 %v707_v10  ;;  %678 = vmatprep.subr.bf16.mxu1 %v707_v10 }
  0x1b   : > { %644 = vmatpush3.bf16.msra.mxu0 %v708_v13  ;;  %686 = vmatpush3.bf16.msra.mxu1 %v708_v13 }
  0x1c   : > { %645 = vmatprep.subr.bf16.mxu0 %v709_v14  ;;  %679 = vmatprep.subr.bf16.mxu1 %v709_v14 }
  0x1f   : > { %646 = vmatpush3.bf16.msra.mxu0 %v710_v15  ;;  %687 = vmatpush3.bf16.msra.mxu1 %v710_v15 }
  0x20   : > { %647 = vmatprep.subr.bf16.mxu0 %v711_v16  ;;  %680 = vmatprep.subr.bf16.mxu1 %v711_v16 }
  0x23   : > { %648 = vmatpush3.bf16.msra.mxu0 %v712_v17  ;;  %688 = vmatpush3.bf16.msra.mxu1 %v712_v17 }
  0x26   : > { %394 = vmatmul.mubr.bf16.vlgmr.msra.gmra.mrb[0].mxu0 %v713_v18  ;;  %410 = vmatmul.mubr.bf16.vlgmr.msra.gmra.mrb[0].mxu1 %v716_v19 }
  0x27   : > { %401 = vmatprep.mubr.bf16.mxu0 %v719_v20  ;;  %417 = vmatprep.mubr.bf16.mxu1 %v722_v21 }
  0x2e   : > { %402 = vmatmul.mubr.bf16.gmra.mrb[4].mxu0 %v721_v22  ;;  %418 = vmatmul.mubr.bf16.gmra.mrb[4].mxu1 %v724_v23 }
  0xf9   : > { %v649_v24 = vpop.f32.mrb[0].mxu0  ;;  %v661_v25 = vpop.f32.mrb[0].mxu1 }
  0xfa   : > { %v650_v27 = vpop.f32.mrb[1].mxu0  ;;  %v662_v28 = vpop.f32.mrb[1].mxu1 }
  0xfb   : > { %v651_v29 = vadd.f32 %v650_v27, %v649_v24  ;;  %v663_v30 = vadd.f32 %v662_v28, %v661_v25  ;;  %v652_v31 = vpop.f32.mrb[2].mxu0  ;;  %v664_v32 = vpop.f32.mrb[2].mxu1 }
  0xfc   : > { %v653_v33 = vpop.f32.mrb[3].mxu0  ;;  %v665_v34 = vpop.f32.mrb[3].mxu1 }
  0xfd   : > { %v862_v35 = vadd.f32 %v651_v29, %v605_v26  ;;  %v864_v36 = vadd.f32 %v663_v30, %v605_v26  ;;  %v654_v37 = vadd.f32 %v653_v33, %v652_v31  ;;  %v666_v38 = vadd.f32 %v665_v34, %v664_v32 }
  0xff   : > { %v866_v39 = vadd.f32 %v666_v38, %v605_v26  ;;  %v427_v40 = vsel %vm426_vm0, %v862_v35, -inf  ;;  %v439_v43 = vsel %vm426_vm0, %v864_v36, -inf  ;;  %v874_v47 = vadd.f32 %v654_v37, %v605_v26 }
 0x100   : > { %428 = vmax.xlane.f32.xlu0 %v427_v40 }
 0x101   : > { %v655_v41 = vpop.f32.mrb[4].mxu0  ;;  %v442_v42 = vsel %vm426_vm0, %v866_v39, -inf  ;;  %v667_v44 = vpop.f32.mrb[4].mxu1  ;;  %v430_v60 = vsel %vm426_vm0, %v874_v47, -inf }
 0x102   : > { %443 = vmax.xlane.f32.xlu1 %v442_v42  ;;  %v656_v45 = vpop.f32.mrb[5].mxu0  ;;  %v668_v46 = vpop.f32.mrb[5].mxu1 }
 0x103   : > { %v657_v48 = vadd.f32 %v656_v45, %v655_v41  ;;  %v658_v49 = vpop.f32.mrb[6].mxu0  ;;  %v669_v50 = vadd.f32 %v668_v46, %v667_v44  ;;  %v670_v51 = vpop.f32.mrb[6].mxu1 }
 0x104   : > { %440 = vmax.xlane.f32.xlu0 %v439_v43  ;;  %v659_v52 = vpop.f32.mrb[7].mxu0  ;;  %v671_v53 = vpop.f32.mrb[7].mxu1 }
 0x105   : > { %v876_v54 = vadd.f32 %v657_v48, %v605_v26  ;;  %v660_v55 = vadd.f32 %v659_v52, %v658_v49  ;;  %v878_v56 = vadd.f32 %v669_v50, %v605_v26  ;;  %v672_v57 = vadd.f32 %v671_v53, %v670_v51 }
 0x107   : > { %v880_v58 = vadd.f32 %v660_v55, %v605_v26  ;;  %v433_v59 = vsel %vm426_vm0, %v876_v54, -inf  ;;  %v886_v61 = vadd.f32 %v672_v57, %v605_v26  ;;  %v445_v63 = vsel %vm426_vm0, %v878_v56, -inf }
 0x108   : > { %434 = vmax.xlane.f32.xlu1 %v433_v59  ;;  %431 = vmax.xlane.f32.xlu0 %v430_v60 }
 0x109   : > { %v436_v62 = vsel %vm426_vm0, %v880_v58, -inf  ;;  %v448_v0 = vsel %vm426_vm0, %v886_v61, -inf }
 0x10c   : > { %437 = vmax.xlane.f32.xlu1 %v436_v62  ;;  %446 = vmax.xlane.f32.xlu0 %v445_v63 }
 0x110   : > { %449 = vmax.xlane.f32.xlu1 %v448_v0 }
 0x18d   : > { %v894_v1 = vpop.xlane.xlu0 %428 }
 0x18e   : > { %v451_v2 = vsub.f32 %v862_v35, %v894_v1 }
 0x18f   : > { %v898_v4 = vpop.xlane.xlu1 %443 }
 0x190   : > { %v459_v3 = vmul.f32 1.442695, %v451_v2  ;;  %v456_v8 = vsub.f32 %v866_v39, %v898_v4 }
 0x191   : > { %v900_v5 = vpop.xlane.xlu0 %440 }
 0x192   : > { %725 = vpow2.f32 %v459_v3  ;;  %v455_v6 = vsub.f32 %v864_v36, %v900_v5  ;;  %v469_v15 = vmul.f32 1.442695, %v456_v8 }
 0x194   : > { %v467_v7 = vmul.f32 1.442695, %v455_v6 }
 0x195   : > { %v906_v9 = vpop.xlane.xlu1 %434  ;;  %v908_v10 = vpop.xlane.xlu0 %431 }
 0x196   : > { %727 = vpow2.f32 %v467_v7  ;;  %v453_v11 = vsub.f32 %v876_v54, %v906_v9  ;;  %v452_v12 = vsub.f32 %v874_v47, %v908_v10 }
 0x198   : > { %v463_v13 = vmul.f32 1.442695, %v453_v11  ;;  %v461_v14 = vmul.f32 1.442695, %v452_v12 }
 0x199   : > { %v914_v16 = vpop.xlane.xlu1 %437  ;;  %v916_v17 = vpop.xlane.xlu0 %446 }
 0x19a   : > { %729 = vpow2.f32 %v463_v13  ;;  %v454_v18 = vsub.f32 %v880_v58, %v914_v16  ;;  %v457_v19 = vsub.f32 %v878_v56, %v916_v17 }
 0x19b   : > { %731 = vpow2.f32 %v461_v14 }
 0x19c   : > { %v726_v20 = vpop.eup %725  ;;  %v471_v21 = vmul.f32 1.442695, %v457_v19  ;;  %733 = vpow2.f32 %v469_v15  ;;  %v465_v22 = vmul.f32 1.442695, %v454_v18 }
 0x19d   : > { %v922_v23 = vpop.xlane.xlu1 %449  ;;  %v475_v24 = vsel %vm426_vm0, %v726_v20, 0.0 }
 0x19e   : > { %v458_v25 = vsub.f32 %v886_v61, %v922_v23  ;;  %476 = vadd.xlane.f32.xlu0 %v475_v24  ;;  %735 = vpow2.f32 %v471_v21 }
 0x19f   : > { %737 = vpow2.f32 %v465_v22 }
 0x1a0   : > { %v728_v26 = vpop.eup %727  ;;  %v473_v27 = vmul.f32 1.442695, %v458_v25 }
 0x1a1   : > { %v487_v28 = vsel %vm426_vm0, %v728_v26, 0.0 }
 0x1a2   : > { %488 = vadd.xlane.f32.xlu0 %v487_v28  ;;  %739 = vpow2.f32 %v473_v27 }
 0x1a4   : > { %v730_v29 = vpop.eup %729 }
 0x1a5   : > { %v732_v30 = vpop.eup %731  ;;  %v481_v31 = vsel %vm426_vm0, %v730_v29, 0.0 }
 0x1a6   : > { %482 = vadd.xlane.f32.xlu0 %v481_v31  ;;  %v478_v32 = vsel %vm426_vm0, %v732_v30, 0.0  ;;  %v734_v33 = vpop.eup %733 }
 0x1a7   : > { %479 = vadd.xlane.f32.xlu1 %v478_v32  ;;  %v490_v37 = vsel %vm426_vm0, %v734_v33, 0.0 }
 0x1a8   : > { %v736_v34 = vpop.eup %735 }
 0x1a9   : > { %v493_v38 = vsel %vm426_vm0, %v736_v34, 0.0  ;;  %v738_v40 = vpop.eup %737 }
 0x1aa   : > { %494 = vadd.xlane.f32.xlu0 %v493_v38  ;;  %v484_v41 = vsel %vm426_vm0, %v738_v40, 0.0 }
 0x1ab   : > { %491 = vadd.xlane.f32.xlu1 %v490_v37 }
 0x1ac   : > { %v740_v42 = vpop.eup %739 }
 0x1ad   : > { %v496_v43 = vsel %vm426_vm0, %v740_v42, 0.0 }
 0x1af   : > { %485 = vadd.xlane.f32.xlu1 %v484_v41 }
 0x1b3   : > { %497 = vadd.xlane.f32.xlu1 %v496_v43 }
 0x22b   : > { %v477_v44 = vpop.xlane.xlu0 %476 }
 0x22c   : > { %741 = vlog2.f32 %v477_v44 }
 0x22f   : > { %v489_v45 = vpop.xlane.xlu0 %488 }
 0x230   : > { %743 = vlog2.f32 %v489_v45 }
 0x233   : > { %v483_v46 = vpop.xlane.xlu0 %482 }
 0x234   : > { %v480_v48 = vpop.xlane.xlu1 %479  ;;  %745 = vlog2.f32 %v483_v46 }
 0x235   : > { %747 = vlog2.f32 %v480_v48 }
 0x236   : > { %v742_v49 = vpop.eup %741 }
 0x237   : > { %v500_v50 = vmul.f32 0.6931472, %v742_v49  ;;  %v495_v52 = vpop.xlane.xlu0 %494 }
 0x238   : > { %v492_v51 = vpop.xlane.xlu1 %491 }
 0x239   : > { %v515_v53 = vadd.f32 %v500_v50, %v894_v1  ;;  %749 = vlog2.f32 %v492_v51 }
 0x23a   : > { %v744_v55 = vpop.eup %743  ;;  %751 = vlog2.f32 %v495_v52 }
 0x23b   : > { %v523_v57 = vsub.f32 %v862_v35, %v515_v53  ;;  %v508_v59 = vmul.f32 0.6931472, %v744_v55 }
 0x23c   : > { %v486_v60 = vpop.xlane.xlu1 %485 }
 0x23d   : > { %531 = vst.msk [vmem:[%s940_s30] sm:$0xff] %vm426_vm0, %v523_v57  ;;  %v519_v62 = vadd.f32 %v508_v59, %v900_v5  ;;  %753 = vlog2.f32 %v486_v60 }
 0x23e   : > { %v746_v63 = vpop.eup %745 }
 0x23f   : > { %v748_v0 = vpop.eup %747  ;;  %v527_v1 = vsub.f32 %v864_v36, %v519_v62  ;;  %v504_v2 = vmul.f32 0.6931472, %v746_v63 }
 0x240   : > { %v502_v3 = vmul.f32 0.6931472, %v748_v0  ;;  %v498_v6 = vpop.xlane.xlu1 %497 }
 0x241   : > { %535 = vst.msk [vmem:[%s940_s30 + $0x20] sm:$0xff] %vm426_vm0, %v527_v1  ;;  %v517_v35 = vadd.f32 %v504_v2, %v906_v9  ;;  %755 = vlog2.f32 %v498_v6 }
 0x242   : > { %v516_v7 = vadd.f32 %v502_v3, %v908_v10 }
 0x243   : > { %v750_v8 = vpop.eup %749  ;;  %v525_v5 = vsub.f32 %v876_v54, %v517_v35 }
 0x244   : > { %v752_v11 = vpop.eup %751  ;;  %v524_v12 = vsub.f32 %v874_v47, %v516_v7  ;;  %v510_v13 = vmul.f32 0.6931472, %v750_v8 }
 0x245   : > { %533 = vst.msk [vmem:[%s940_s30 + $0x10] sm:$0xff] %vm426_vm0, %v525_v5  ;;  %v512_v36 = vmul.f32 0.6931472, %v752_v11 }
 0x246   : > { %532 = vst.msk [vmem:[%s940_s30 + $0x8] sm:$0xff] %vm426_vm0, %v524_v12  ;;  %v520_v9 = vadd.f32 %v510_v13, %v898_v4 }
 0x247   : > { %v754_v14 = vpop.eup %753  ;;  %v521_v10 = vadd.f32 %v512_v36, %v916_v17 }
 0x248   : > { %v528_v15 = vsub.f32 %v866_v39, %v520_v9  ;;  %v506_v54 = vmul.f32 0.6931472, %v754_v14 }
 0x249   : > { %v529_v18 = vsub.f32 %v878_v56, %v521_v10 }
 0x24a   : > { %536 = vst.msk [vmem:[%s940_s30 + $0x28] sm:$0xff] %vm426_vm0, %v528_v15  ;;  %v518_v47 = vadd.f32 %v506_v54, %v914_v16 }
 0x24b   : > { %v756_v19 = vpop.eup %755  ;;  %537 = vst.msk [vmem:[%s940_s30 + $0x30] sm:$0xff] %vm426_vm0, %v529_v18 }
 0x24c   : > { %v526_v20 = vsub.f32 %v880_v58, %v518_v47  ;;  %v514_v21 = vmul.f32 0.6931472, %v756_v19 }
 0x24e   : > { %534 = vst.msk [vmem:[%s940_s30 + $0x18] sm:$0xff] %vm426_vm0, %v526_v20  ;;  %v522_v4 = vadd.f32 %v514_v21, %v922_v23 }
 0x250   : > { %v530_v17 = vsub.f32 %v886_v61, %v522_v4 }
 0x252   : > { %538 = vst.msk [vmem:[%s940_s30 + $0x38] sm:$0xff] %vm426_vm0, %v530_v17 }
 0x253 PF: > { %s13_s12 = sadd.s32 1, %s763_s12  }
 0x254   : > { %p10_p4 = scmp.ge.s32.totalorder %s13_s12, 6  }
 0x256   :  { %12 = sbr.rel (!%p10_p4) target bundleno = 1 (0x1), region = 62 }

// kernel: gcn_forward.2
= control target key start
LH: loop header
LB: loop body
LE: loop exit
PB: predicated region body
PF: predicated region fallthrough
CT: control target
= control target key end

     0   :  { %s656_s12 = smov 0   ;;  %s751_s0 = inlined_call_operand.vmem [shape: bf16[256,256], index: 0, kind: input, shape index: {}]   ;;  %s752_s1 = inlined_call_operand.vmem [shape: bf16[256,128], index: 1, kind: input, shape index: {}]   ;;  %s753_s2 = inlined_call_operand.vmem [shape: f32[1,128], index: 2, kind: input, shape index: {}]   ;;  %s754_s3 = inlined_call_operand.vmem [shape: f32[256,128], index: 3, kind: output, shape index: {}]  }
   0x1 LB: > { %s498_s13 = sadd.s32 4294967295, %s634_s12   ;;  %p502_p0 = scmp.ge.s32.totalorder %s634_s12, 1  ;;  %s634_s12 = sphi %s656_s12, %s13_s12  }
   0x2   : > { %p139_p1 = scmp.lt.s32.totalorder %s634_s12, 5 }
   0x4   : > { %p140_p2 = pnand %p502_p0, %p139_p1 }
   0x5   : > { %v600_v0 = vld [vmem:[%s752_s1 + $0x40] sm:$0xff] (!%p140_p2)   ;;  %s503_s16 = sshll.u32 (!%p140_p2), %s498_s13, 3  ;;  %v602_v2 = vld [vmem:[%s752_s1 + $0x48] sm:$0xff] (!%p140_p2)   ;;  %v604_v4 = vld [vmem:[%s752_s1 + $0x50] sm:$0xff] (!%p140_p2)  }
   0x6   : > { %143 = sbr.rel (%p140_p2) target bundleno = 268 (0x10c), region = 32  ;;  %v601_v1 = vld [vmem:[%s752_s1] sm:$0xff] (!%p140_p2)   ;;  %536 = vmatprep.subr.bf16.mxu0 (!%p140_p2), %v600_v0  ;;  %576 = vmatprep.subr.bf16.mxu1 (!%p140_p2), %v600_v0  ;;  %v603_v3 = vld [vmem:[%s752_s1 + $0x8] sm:$0xff] (!%p140_p2)   ;;  %p165_p3 = scmp.lt.s32.totalorder (!%p140_p2), %s503_s16, 31  ;;  %v605_v5 = vld [vmem:[%s752_s1 + $0x10] sm:$0xff] (!%p140_p2)  }
   0x7   : > { %537 = vmatpush3.bf16.msra.mxu0 (!%p140_p2), %v601_v1  ;;  %584 = vmatpush3.bf16.msra.mxu1 (!%p140_p2), %v601_v1  ;;  %v606_v6 = vld [vmem:[%s752_s1 + $0x58] sm:$0xff] (!%p140_p2)   ;;  %v608_v8 = vld [vmem:[%s752_s1 + $0x60] sm:$0xff] (!%p140_p2)   ;;  %v610_v10 = vld [vmem:[%s752_s1 + $0x68] sm:$0xff] (!%p140_p2)  }
   0x8   : > { %538 = vmatprep.subr.bf16.mxu0 (!%p140_p2), %v602_v2  ;;  %577 = vmatprep.subr.bf16.mxu1 (!%p140_p2), %v602_v2  ;;  %v607_v7 = vld [vmem:[%s752_s1 + $0x18] sm:$0xff] (!%p140_p2)   ;;  %v609_v9 = vld [vmem:[%s752_s1 + $0x20] sm:$0xff] (!%p140_p2)   ;;  %v611_v13 = vld [vmem:[%s752_s1 + $0x28] sm:$0xff] (!%p140_p2)  }
   0x9   : > { %v612_v14 = vld [vmem:[%s752_s1 + $0x70] sm:$0xff] (!%p140_p2)   ;;  %v614_v16 = vld [vmem:[%s752_s1 + $0x78] sm:$0xff] (!%p140_p2)   ;;  %v508_v26 = vld [vmem:[%s753_s2] ss:$0 sm:$0xff] (!%p140_p2) }
   0xa   : > { %v613_v15 = vld [vmem:[%s752_s1 + $0x30] sm:$0xff] (!%p140_p2)   ;;  %v615_v17 = vld [vmem:[%s752_s1 + $0x38] sm:$0xff] (!%p140_p2)  }
   0xb   : > { %539 = vmatpush3.bf16.msra.mxu0 (!%p140_p2), %v603_v3  ;;  %585 = vmatpush3.bf16.msra.mxu1 (!%p140_p2), %v603_v3 }
   0xc   : > { %540 = vmatprep.subr.bf16.mxu0 (!%p140_p2), %v604_v4  ;;  %578 = vmatprep.subr.bf16.mxu1 (!%p140_p2), %v604_v4 }
   0xd   : > { %s756_s16 = smov (!%p165_p3, %s503_s16), 31 }
   0xe   : > { %s535_s4 = sshll.u32 %s756_s16, 3 }
   0xf   : > { %541 = vmatpush3.bf16.msra.mxu0 %v605_v5  ;;  %586 = vmatpush3.bf16.msra.mxu1 %v605_v5  ;;  %s699_s9 = scalar_lea.vmem %s751_s0, %s535_s4  ;;  %s738_s30 = scalar_lea.vmem %s754_s3, %s535_s4 }
  0x10   : > { %542 = vmatprep.subr.bf16.mxu0 %v606_v6  ;;  %579 = vmatprep.subr.bf16.mxu1 %v606_v6  ;;  %v618_v11 = vld [vmem:[%s699_s9 + $0x4] ss:$8 sps:$4 sm:$0xff]   ;;  %v616_v18 = vld [vmem:[%s699_s9] ss:$8 sps:$4 sm:$0xff]   ;;  %v622_v20 = vld [vmem:[%s699_s9 + $0x14] ss:$8 sps:$4 sm:$0xff]  }
  0x11   : > { %v621_v12 = vld [vmem:[%s699_s9 + $0x24] ss:$8 sps:$4 sm:$0xff]   ;;  %393 = vmatprep.mubr.bf16.mxu0 %v618_v11  ;;  %v619_v19 = vld [vmem:[%s699_s9 + $0x20] ss:$8 sps:$4 sm:$0xff]   ;;  %v624_v21 = vld [vmem:[%s699_s9 + $0x34] ss:$8 sps:$4 sm:$0xff]  }
  0x12   : > { %409 = vmatprep.mubr.bf16.mxu1 %v621_v12  ;;  %v626_v22 = vld [vmem:[%s699_s9 + $0x10] ss:$8 sps:$4 sm:$0xff]  }
  0x13   : > { %543 = vmatpush3.bf16.msra.mxu0 %v607_v7  ;;  %587 = vmatpush3.bf16.msra.mxu1 %v607_v7  ;;  %v627_v23 = vld [vmem:[%s699_s9 + $0x30] ss:$8 sps:$4 sm:$0xff]  }
  0x14   : > { %544 = vmatprep.subr.bf16.mxu0 %v608_v8  ;;  %580 = vmatprep.subr.bf16.mxu1 %v608_v8 }
  0x17   : > { %545 = vmatpush3.bf16.msra.mxu0 %v609_v9  ;;  %588 = vmatpush3.bf16.msra.mxu1 %v609_v9 }
  0x18   : > { %546 = vmatprep.subr.bf16.mxu0 %v610_v10  ;;  %581 = vmatprep.subr.bf16.mxu1 %v610_v10 }
  0x1b   : > { %547 = vmatpush3.bf16.msra.mxu0 %v611_v13  ;;  %589 = vmatpush3.bf16.msra.mxu1 %v611_v13 }
  0x1c   : > { %548 = vmatprep.subr.bf16.mxu0 %v612_v14  ;;  %582 = vmatprep.subr.bf16.mxu1 %v612_v14 }
  0x1f   : > { %549 = vmatpush3.bf16.msra.mxu0 %v613_v15  ;;  %590 = vmatpush3.bf16.msra.mxu1 %v613_v15 }
  0x20   : > { %550 = vmatprep.subr.bf16.mxu0 %v614_v16  ;;  %583 = vmatprep.subr.bf16.mxu1 %v614_v16 }
  0x23   : > { %551 = vmatpush3.bf16.msra.mxu0 %v615_v17  ;;  %591 = vmatpush3.bf16.msra.mxu1 %v615_v17 }
  0x26   : > { %394 = vmatmul.mubr.bf16.vlgmr.msra.gmra.mrb[0].mxu0 %v616_v18  ;;  %410 = vmatmul.mubr.bf16.vlgmr.msra.gmra.mrb[0].mxu1 %v619_v19 }
  0x27   : > { %401 = vmatprep.mubr.bf16.mxu0 %v622_v20  ;;  %417 = vmatprep.mubr.bf16.mxu1 %v624_v21 }
  0x2e   : > { %402 = vmatmul.mubr.bf16.gmra.mrb[4].mxu0 %v626_v22  ;;  %418 = vmatmul.mubr.bf16.gmra.mrb[4].mxu1 %v627_v23 }
  0xf9   : > { %v552_v24 = vpop.f32.mrb[0].mxu0  ;;  %v564_v25 = vpop.f32.mrb[0].mxu1 }
  0xfa   : > { %v553_v27 = vpop.f32.mrb[1].mxu0  ;;  %v565_v28 = vpop.f32.mrb[1].mxu1 }
  0xfb   : > { %v554_v29 = vadd.f32 %v553_v27, %v552_v24  ;;  %v566_v30 = vadd.f32 %v565_v28, %v564_v25  ;;  %v555_v31 = vpop.f32.mrb[2].mxu0  ;;  %v567_v32 = vpop.f32.mrb[2].mxu1 }
  0xfc   : > { %v556_v33 = vpop.f32.mrb[3].mxu0  ;;  %v568_v34 = vpop.f32.mrb[3].mxu1 }
  0xfd   : > { %v396_v35 = vadd.f32 %v554_v29, %v508_v26  ;;  %v412_v36 = vadd.f32 %v566_v30, %v508_v26  ;;  %v557_v37 = vadd.f32 %v556_v33, %v555_v31  ;;  %v569_v38 = vadd.f32 %v568_v34, %v567_v32 }
  0xff   : > { %v426_v39 = vmax.f32 %v396_v35, 0.0  ;;  %v430_v40 = vmax.f32 %v412_v36, 0.0  ;;  %v399_v41 = vadd.f32 %v557_v37, %v508_v26  ;;  %v415_v42 = vadd.f32 %v569_v38, %v508_v26 }
 0x101   : > { %434 = vst [vmem:[%s738_s30] sm:$0xff] %v426_v39  ;;  %438 = vst [vmem:[%s738_s30 + $0x20] sm:$0xff] %v430_v40  ;;  %v427_v43 = vmax.f32 %v399_v41, 0.0  ;;  %v431_v44 = vmax.f32 %v415_v42, 0.0  ;;  %v558_v45 = vpop.f32.mrb[4].mxu0  ;;  %v570_v46 = vpop.f32.mrb[4].mxu1 }
 0x102   : > { %v559_v47 = vpop.f32.mrb[5].mxu0  ;;  %v571_v48 = vpop.f32.mrb[5].mxu1 }
 0x103   : > { %435 = vst [vmem:[%s738_s30 + $0x8] sm:$0xff] %v427_v43  ;;  %439 = vst [vmem:[%s738_s30 + $0x28] sm:$0xff] %v431_v44  ;;  %v560_v49 = vadd.f32 %v559_v47, %v558_v45  ;;  %v572_v50 = vadd.f32 %v571_v48, %v570_v46  ;;  %v561_v51 = vpop.f32.mrb[6].mxu0  ;;  %v573_v52 = vpop.f32.mrb[6].mxu1 }
 0x104   : > { %v562_v53 = vpop.f32.mrb[7].mxu0  ;;  %v574_v54 = vpop.f32.mrb[7].mxu1 }
 0x105   : > { %v404_v55 = vadd.f32 %v560_v49, %v508_v26  ;;  %v420_v56 = vadd.f32 %v572_v50, %v508_v26  ;;  %v563_v57 = vadd.f32 %v562_v53, %v561_v51  ;;  %v575_v58 = vadd.f32 %v574_v54, %v573_v52 }
 0x107   : > { %v428_v59 = vmax.f32 %v404_v55, 0.0  ;;  %v432_v60 = vmax.f32 %v420_v56, 0.0  ;;  %v407_v61 = vadd.f32 %v563_v57, %v508_v26  ;;  %v423_v62 = vadd.f32 %v575_v58, %v508_v26 }
 0x109   : > { %436 = vst [vmem:[%s738_s30 + $0x10] sm:$0xff] %v428_v59  ;;  %440 = vst [vmem:[%s738_s30 + $0x30] sm:$0xff] %v432_v60  ;;  %v429_v63 = vmax.f32 %v407_v61, 0.0  ;;  %v433_v0 = vmax.f32 %v423_v62, 0.0 }
 0x10b   : > { %437 = vst [vmem:[%s738_s30 + $0x18] sm:$0xff] %v429_v63  ;;  %441 = vst [vmem:[%s738_s30 + $0x38] sm:$0xff] %v433_v0 }
 0x10c PF: > { %s13_s12 = sadd.s32 1, %s634_s12  }
 0x10d   : > { %p10_p4 = scmp.ge.s32.totalorder %s13_s12, 6  }
 0x10f   :  { %12 = sbr.rel (!%p10_p4) target bundleno = 1 (0x1), region = 62 }

</bundles_post_ra>
